<compile_context>
chip_gen: v5e
topology: v5e:2x2
jax: 0.10.0
libtpu: 0.0.40
codegen_flags: <defaults>
</compile_context>

<pallas_src>
import jax
import jax.numpy as jnp
from jax.experimental import pallas as pl
from jax.experimental.pallas import tpu as pltpu


def _sublane_multiple(dtype) -> int:
    # Sub-32-bit dtypes pack along sublanes: 16 rows for 2-byte, 32 for 1-byte.
    return {4: 8, 2: 16, 1: 32}.get(jnp.dtype(dtype).itemsize, 8)


def _round_up(n, m):
    return ((n + m - 1) // m) * m


def _head_kernel(x_ref, w1_ref, b1_ref, w2_ref, b2_ref, o_ref):
    hp = jax.lax.Precision.HIGHEST  # exact for f32 weights; free for bf16 weights
    # dense: (TB, first) @ (first, second) -> f32 accumulation on the MXU.
    h = jnp.dot(x_ref[...], w1_ref[...],
                preferred_element_type=jnp.float32, precision=hp)
    h = h + b1_ref[...]            # bias add in f32 (safe on v5e: no bf16 VPU)
    h = jnp.tanh(h)                # tanh in f32 on the EUP
    # out_proj: (TB, second) @ (second, third) -> f32 accumulation.
    out = jnp.dot(h.astype(w2_ref.dtype), w2_ref[...],
                  preferred_element_type=jnp.float32, precision=hp)
    out = out + b2_ref[...]
    o_ref[...] = out.astype(o_ref.dtype)   # single full-block store


def prepare_params(w_dense, b_dense, w_out, b_out, *, weights_dtype=None):
    """One-time parameter prep.  Call once at init, NOT per forward call.

    Weights are stored pre-transposed as (in, out).  Pass
    weights_dtype=jnp.bfloat16 for realistic hidden sizes: bf16 runs at native
    MXU rate on v5e/v6e/v7x and halves weight DMA / resident VMEM.
    """
    if weights_dtype is not None:
        w_dense = w_dense.astype(weights_dtype)
        w_out = w_out.astype(weights_dtype)
    b1 = jnp.reshape(b_dense, (1, -1)).astype(jnp.float32)
    b2 = jnp.reshape(b_out, (1, -1)).astype(jnp.float32)
    return w_dense, b1, w_out, b2


def classification_head(x, params, *, block_b=1024, core_parallel=False,
                        single_buffer_weights=False, vmem_limit_bytes=None):
    """Pallas forward for ClassificationHead (eval mode: dropout = identity).

    Args:
      x:       (B, first) activations (f32 or bf16).
      params:  output of prepare_params(): (w_dense, b_dense_f32, w_out, b_out_f32).
      block_b: batch tile for the tiled path (rounded to the dtype sublane multiple).
      core_parallel: v7x only — shard the batch grid axis across the 2 TensorCores.
      single_buffer_weights: v7x / large-hidden — single-buffer the resident
        weight/bias blocks to halve their VMEM footprint.
      vmem_limit_bytes: optional explicit scoped-VMEM limit.

    Returns:
      (B, third) logits in x.dtype.
    """
    w1, b1, w2, b2 = params
    B, first = x.shape
    second = w1.shape[1]
    third = w2.shape[1]
    dtype = x.dtype

    cost = pl.CostEstimate(
        flops=2 * B * (first * second + second * third),
        transcendentals=B * second,
        bytes_accessed=(x.nbytes + w1.nbytes + b1.nbytes + w2.nbytes + b2.nbytes
                        + B * third * jnp.dtype(dtype).itemsize),
    )

    sub = _sublane_multiple(dtype)
    block_b = _round_up(max(block_b, sub), sub)

    if B <= block_b:
        # ---- Single-block path: no grid, no pipeline/loop bookkeeping. ----
        return pl.pallas_call(
            _head_kernel,
            out_shape=jax.ShapeDtypeStruct((B, third), dtype),
            in_specs=[pl.BlockSpec(memory_space=pltpu.MemorySpace.VMEM)] * 5,
            out_specs=pl.BlockSpec(memory_space=pltpu.MemorySpace.VMEM),
            cost_estimate=cost,
        )(x, w1, b1, w2, b2)

    # ---- Batch-tiled path: weights/biases VMEM-resident (constant index maps),
    # activations streamed; partial final block masked by Pallas (no padding). ----
    TB = block_b
    weight_mode = pl.Buffered(1) if single_buffer_weights else None
    dim_sem = (pltpu.CORE_PARALLEL,) if core_parallel else ("parallel",)
    cp_kwargs = dict(dimension_semantics=dim_sem)
    if vmem_limit_bytes is not None:
        cp_kwargs["vmem_limit_bytes"] = vmem_limit_bytes

    return pl.pallas_call(
        _head_kernel,
        out_shape=jax.ShapeDtypeStruct((B, third), dtype),
        grid=(pl.cdiv(B, TB),),
        in_specs=[
            pl.BlockSpec((TB, first), lambda i: (i, 0)),
            pl.BlockSpec((first, second), lambda i: (0, 0),
                         pipeline_mode=weight_mode),
            pl.BlockSpec((1, second), lambda i: (0, 0),
                         pipeline_mode=weight_mode),
            pl.BlockSpec((second, third), lambda i: (0, 0),
                         pipeline_mode=weight_mode),
            pl.BlockSpec((1, third), lambda i: (0, 0),
                         pipeline_mode=weight_mode),
        ],
        out_specs=pl.BlockSpec((TB, third), lambda i: (i, 0)),
        compiler_params=pltpu.CompilerParams(**cp_kwargs),
        cost_estimate=cost,
    )(x, w1, b1, w2, b2)


def _reference(x, w1, b1, w2, b2):
    hp = jax.lax.Precision.HIGHEST
    h = jnp.tanh(jnp.dot(x, w1, precision=hp) + jnp.reshape(b1, (1, -1)))
    return jnp.dot(h, w2, precision=hp) + jnp.reshape(b2, (1, -1))


if __name__ == "__main__":
    # Module hyperparams (small): first=32, second=32, third=8.
    FIRST, SECOND, THIRD = 32, 32, 8

    key = jax.random.PRNGKey(0)
    kx, kw1, kb1, kw2, kb2, kx2 = jax.random.split(key, 6)

    # nn.Linear-shaped params, stored transposed as (in, out).
    w_dense = jax.random.normal(kw1, (FIRST, SECOND), dtype=jnp.float32) * 0.05
    b_dense = jax.random.normal(kb1, (1, SECOND), dtype=jnp.float32) * 0.01
    w_out = jax.random.normal(kw2, (SECOND, THIRD), dtype=jnp.float32) * 0.05
    b_out = jax.random.normal(kb2, (1, THIRD), dtype=jnp.float32) * 0.01

    # TODO(synk): training-mode dropout (hidden_dropout_prob) not implemented;
    # eval semantics (identity) are used, matching PyTorch module.eval().

    params_f32 = prepare_params(w_dense, b_dense, w_out, b_out)

    # --- small batch: exercises the no-grid single-block path ---
    B1 = 8
    x1 = jax.random.normal(kx, (B1, FIRST), dtype=jnp.float32)
    out1 = jax.block_until_ready(classification_head(x1, params_f32))
    ref1 = _reference(x1, w_dense, b_dense, w_out, b_out)
    assert out1.shape == (B1, THIRD)
    assert jnp.allclose(out1, ref1, atol=1e-4, rtol=1e-4), "small-batch mismatch"

    # --- larger, non-multiple batch: batch-tiled path with a partial last block ---
    B2 = 300
    x2 = jax.random.normal(kx2, (B2, FIRST), dtype=jnp.float32)
    out2 = jax.block_until_ready(
        classification_head(x2, params_f32, block_b=128))
    ref2 = _reference(x2, w_dense, b_dense, w_out, b_out)
    assert out2.shape == (B2, THIRD)
    assert jnp.allclose(out2, ref2, atol=1e-4, rtol=1e-4), "tiled-batch mismatch"

    # --- bf16 activations + bf16 weights (realistic serving config) ---
    params_bf16 = prepare_params(w_dense, b_dense, w_out, b_out,
                                 weights_dtype=jnp.bfloat16)
    x3 = x2.astype(jnp.bfloat16)
    out3 = jax.block_until_ready(
        classification_head(x3, params_bf16, block_b=128))
    assert out3.shape == (B2, THIRD) and out3.dtype == jnp.bfloat16
    assert jnp.allclose(out3.astype(jnp.float32), ref2, atol=5e-2, rtol=5e-2), \
        "bf16 mismatch"

    print("KERNEL_OK")
</pallas_src>

<mosaic_0001>
module attributes {stable_mosaic.version = 11 : i64} {
  func.func @_head_kernel(%arg0: memref<8x32xf32, #tpu.memory_space<vmem>>, %arg1: memref<32x32xf32, #tpu.memory_space<vmem>>, %arg2: memref<1x32xf32, #tpu.memory_space<vmem>>, %arg3: memref<32x8xf32, #tpu.memory_space<vmem>>, %arg4: memref<1x8xf32, #tpu.memory_space<vmem>>, %arg5: memref<8x8xf32, #tpu.memory_space<vmem>>) attributes {dimension_semantics = [], scalar_prefetch = 0 : i64, scratch_operands = 0 : i64, tpu.core_type = #tpu.core_type<tc>} {
    %c0 = arith.constant 0 : index
    %c0_0 = arith.constant 0 : index
    %0 = vector.load %arg0[%c0, %c0_0] : memref<8x32xf32, #tpu.memory_space<vmem>>, vector<8x32xf32>
    %c0_1 = arith.constant 0 : index
    %c0_2 = arith.constant 0 : index
    %1 = vector.load %arg1[%c0_1, %c0_2] : memref<32x32xf32, #tpu.memory_space<vmem>>, vector<32x32xf32>
    %cst = arith.constant dense<0.000000e+00> : vector<8x32xf32>
    %2 = tpu.matmul %0, %1, %cst {dimension_numbers = #tpu.dot_dimension_numbers<[1], [0], [0], [1], [0, 0, 1, 1], [], []>, precision = #tpu.contract_precision<fp32>} : vector<8x32xf32>, vector<32x32xf32>, vector<8x32xf32> -> vector<8x32xf32>
    %c0_3 = arith.constant 0 : index
    %c0_4 = arith.constant 0 : index
    %3 = vector.load %arg2[%c0_3, %c0_4] : memref<1x32xf32, #tpu.memory_space<vmem>>, vector<1x32xf32>
    %4 = vector.broadcast %3 : vector<1x32xf32> to vector<8x32xf32>
    %5 = arith.addf %2, %4 : vector<8x32xf32>
    %6 = math.tanh %5 : vector<8x32xf32>
    %c0_5 = arith.constant 0 : index
    %c0_6 = arith.constant 0 : index
    %7 = vector.load %arg3[%c0_5, %c0_6] : memref<32x8xf32, #tpu.memory_space<vmem>>, vector<32x8xf32>
    %cst_7 = arith.constant dense<0.000000e+00> : vector<8x8xf32>
    %8 = tpu.matmul %6, %7, %cst_7 {dimension_numbers = #tpu.dot_dimension_numbers<[1], [0], [0], [1], [0, 0, 1, 1], [], []>, precision = #tpu.contract_precision<fp32>} : vector<8x32xf32>, vector<32x8xf32>, vector<8x8xf32> -> vector<8x8xf32>
    %c0_8 = arith.constant 0 : index
    %c0_9 = arith.constant 0 : index
    %9 = vector.load %arg4[%c0_8, %c0_9] : memref<1x8xf32, #tpu.memory_space<vmem>>, vector<1x8xf32>
    %10 = vector.broadcast %9 : vector<1x8xf32> to vector<8x8xf32>
    %11 = arith.addf %8, %10 : vector<8x8xf32>
    %c0_10 = arith.constant 0 : index
    %c0_11 = arith.constant 0 : index
    %12 = vector.load %arg5[%c0_10, %c0_11] : memref<8x8xf32, #tpu.memory_space<vmem>>, vector<8x8xf32>
    tpu.vector_store %arg5[%c0_10, %c0_11], %11 {strides = array<i32>} : memref<8x8xf32, #tpu.memory_space<vmem>>, vector<8x8xf32>,
    return
  }
}

</mosaic_0001>

<bundles_post_ra>
// kernel: tpu_custom_call.1
= control target key start
LH: loop header
LB: loop body
LE: loop exit
PB: predicated region body
PF: predicated region fallthrough
CT: control target
= control target key end

     0   :  { %vm30_vm0 = vcmask 261120   ;;  %s534_s0 = inlined_call_operand.vmem [shape: f32[8,32], index: 0, kind: input, shape index: {}]   ;;  %s535_s1 = inlined_call_operand.vmem [shape: f32[32,32], index: 1, kind: input, shape index: {}]   ;;  %s536_s2 = inlined_call_operand.vmem [shape: f32[1,32], index: 2, kind: input, shape index: {}]   ;;  %s537_s3 = inlined_call_operand.vmem [shape: f32[32,8], index: 3, kind: input, shape index: {}]   ;;  %s538_s4 = inlined_call_operand.vmem [shape: f32[1,8], index: 4, kind: input, shape index: {}]   ;;  %s539_s5 = inlined_call_operand.hbm [shape: f32[8,8], index: 5, kind: output, shape index: {}]  }
   0x1   :  { %v25_v0 = vld [vmem:[%s535_s1 + $0x18] sm:$0xff]  ;;  %v24_v1 = vld [vmem:[%s535_s1 + $0x10] sm:$0xff]  ;;  %v23_v2 = vld [vmem:[%s535_s1 + $0x8] sm:$0xff] }
   0x2   :  { %v46_v3 = vand.u32 4294901760, %v25_v0  ;;  %v48_v4 = vand.u32 4294901760, %v24_v1  ;;  %v50_v5 = vand.u32 4294901760, %v23_v2  ;;  %v22_v6 = vld [vmem:[%s535_s1] sm:$0xff] }
   0x3   :  { %v21_v7 = vld [vmem:[%s534_s0] sm:$0xff]  ;;  %v52_v8 = vand.u32 4294901760, %v22_v6 }
   0x4   :  { %v32_v9 = vsel %vm30_vm0, %v21_v7, 0  ;;  %v76_v10 = vsub.f32 %v25_v0, %v46_v3  ;;  %47 = vmatpush.msra.mxu0 %v46_v3  ;;  %v82_v11 = vsub.f32 %v24_v1, %v48_v4  ;;  %147 = vmatpush.msra.mxu3 %v46_v3  ;;  %v88_v12 = vsub.f32 %v23_v2, %v50_v5 }
   0x5   :  { %v54_v13 = vand.u32 4294901760, %v32_v9 }
   0x6   :  { %10 = vsyncpa [#allocation3], 0  ;;  %v94_v14 = vsub.f32 %v22_v6, %v52_v8  ;;  %118 = vmatpush.msra.mxu2 %v76_v10  ;;  %49 = vmatpush.msra.mxu0 %v48_v4  ;;  %v77_v15 = vand.u32 4294901760, %v76_v10  ;;  %v83_v16 = vand.u32 4294901760, %v82_v11  ;;  %v89_v18 = vand.u32 4294901760, %v88_v12  ;;  %v223_v31 = vld [vmem:[%s537_s3 + $0x18] sm:$0xff] }
   0x7   :  { %v55_v17 = vsub.f32 %v32_v9, %v54_v13  ;;  %149 = vmatpush.msra.mxu3 %v48_v4  ;;  %v243_v32 = vand.u32 4294901760, %v223_v31  ;;  %v222_v33 = vld [vmem:[%s537_s3 + $0x10] sm:$0xff]  ;;  %v221_v36 = vld [vmem:[%s537_s3 + $0x8] sm:$0xff]  ;;  %v220_v40 = vld [vmem:[%s537_s3] sm:$0xff]  ;;  %s465_s11 = smov [#allocation2]   ;;  %s425_s15 = sshll.u32 %s539_s5, 4  ;;  %s426_s15 = int_to_ptr.hbm [resolvable:$true] %s425_s15 }
   0x8   :  { %v95_v19 = vand.u32 4294901760, %v94_v14  ;;  %121 = vmatpush.msra.mxu2 %v82_v11  ;;  %v78_v20 = vsub.f32 %v76_v10, %v77_v15  ;;  %51 = vmatpush.msra.mxu0 %v50_v5  ;;  %v84_v21 = vsub.f32 %v82_v11, %v83_v16  ;;  %v90_v22 = vsub.f32 %v88_v12, %v89_v18  ;;  %v435_v55 = vld [vmem:[%s536_s2] ss:$0 sm:$0xff]  ;;  %s423_s12 = sshll.u32 %s465_s11, 4  ;;  %s424_s12 = int_to_ptr.vmem [resolvable:$true] %s423_s12 }
   0x9   :  { %v56_v23 = vand.u32 4294901760, %v55_v17  ;;  %151 = vmatpush.msra.mxu3 %v50_v5  ;;  %v273_v34 = vsub.f32 %v223_v31, %v243_v32  ;;  %v245_v35 = vand.u32 4294901760, %v222_v33  ;;  %v247_v39 = vand.u32 4294901760, %v221_v36  ;;  %v436_v11 = vld [vmem:[%s538_s4] ss:$0 sm:$0xff] }
   0xa   :  { %v79_v24 = vand.u32 4294901760, %v78_v20  ;;  %124 = vmatpush.msra.mxu2 %v88_v12  ;;  %v85_v25 = vand.u32 4294901760, %v84_v21  ;;  %53 = vmatpush.msra.mxu0 %v52_v8  ;;  %v96_v27 = vsub.f32 %v94_v14, %v95_v19  ;;  %v91_v28 = vand.u32 4294901760, %v90_v22 }
   0xb   :  { %v57_v26 = vsub.f32 %v55_v17, %v56_v23  ;;  %153 = vmatpush.msra.mxu3 %v52_v8  ;;  %v274_v37 = vand.u32 4294901760, %v273_v34  ;;  %v279_v38 = vsub.f32 %v222_v33, %v245_v35  ;;  %v285_v43 = vsub.f32 %v221_v36, %v247_v39 }
   0xc   :  { %176 = vmatpush.msrb.mxu0 %v77_v15  ;;  %80 = vmatpush.msra.mxu1 %v79_v24  ;;  %v97_v30 = vand.u32 4294901760, %v96_v27  ;;  %v249_v44 = vand.u32 4294901760, %v220_v40  ;;  %vm416_vm1 = vcmask 64512  }
   0xd   :  { %127 = vmatpush.msra.mxu2 %v94_v14  ;;  %v58_v29 = vand.u32 4294901760, %v57_v26  ;;  %157 = vmatmul.f32.vlgmr.msra.gmra.mxu3 %v56_v23  ;;  %v275_v41 = vsub.f32 %v273_v34, %v274_v37  ;;  %v280_v42 = vand.u32 4294901760, %v279_v38  ;;  %v286_v47 = vand.u32 4294901760, %v285_v43 }
   0xe   :  { %130 = vmatmul.f32.vlgmr.msra.gmra.mxu2 %v55_v17  ;;  %86 = vmatpush.msra.mxu1 %v85_v25  ;;  %v291_v48 = vsub.f32 %v220_v40, %v249_v44 }
   0xf   :  { %59 = vmatmul.f32.vlgmr.msra.gmra.mxu0 %v58_v29  ;;  %244 = vmatpush.msrb.mxu2 %v243_v32  ;;  %v276_v45 = vand.u32 4294901760, %v275_v41  ;;  %v281_v46 = vsub.f32 %v279_v38, %v280_v42  ;;  %v287_v50 = vsub.f32 %v285_v43, %v286_v47 }
  0x10   :  { %180 = vmatpush.msrb.mxu0 %v83_v16  ;;  %92 = vmatpush.msra.mxu1 %v91_v28  ;;  %v292_v51 = vand.u32 4294901760, %v291_v48 }
  0x11   :  { %246 = vmatpush.msrb.mxu2 %v245_v35  ;;  %277 = vmatpush.msrb.mxu3 %v276_v45  ;;  %v282_v49 = vand.u32 4294901760, %v281_v46  ;;  %v288_v52 = vand.u32 4294901760, %v287_v50 }
  0x12   :  { %184 = vmatpush.msrb.mxu0 %v89_v18  ;;  %98 = vmatpush.msra.mxu1 %v97_v30  ;;  %v293_v53 = vsub.f32 %v291_v48, %v292_v51 }
  0x13   :  { %100 = vmatmul.f32.vlgmr.msra.gmra.mxu1 %v54_v13  ;;  %248 = vmatpush.msrb.mxu2 %v247_v39 }
  0x14   :  { %188 = vmatpush.msrb.mxu0 %v95_v19  ;;  %207 = vmatpush.msrb.mxu1 %v46_v3  ;;  %v294_v54 = vand.u32 4294901760, %v293_v53 }
  0x15   :  { %250 = vmatpush.msrb.mxu2 %v249_v44  ;;  %283 = vmatpush.msrb.mxu3 %v282_v49 }
  0x16   :  { %209 = vmatpush.msrb.mxu1 %v48_v4  ;;  %315 = vmatpush.msra.mxu0 %v273_v34 }
  0x17   :  { %190 = vmatmul.f32.vlgmr.msrb.gmra.mxu0 %v54_v13  ;;  %373 = vmatpush.msra.mxu2 %v274_v37 }
  0x18   :  { %211 = vmatpush.msrb.mxu1 %v50_v5  ;;  %318 = vmatpush.msra.mxu0 %v279_v38 }
  0x19   :  { %377 = vmatpush.msra.mxu2 %v280_v42  ;;  %289 = vmatpush.msrb.mxu3 %v288_v52 }
  0x1a   :  { %213 = vmatpush.msrb.mxu1 %v52_v8  ;;  %321 = vmatpush.msra.mxu0 %v285_v43 }
  0x1b   :  { %215 = vmatmul.f32.vlgmr.msrb.gmra.mxu1 %v54_v13  ;;  %381 = vmatpush.msra.mxu2 %v286_v47 }
  0x1c   :  { %344 = vmatpush.msra.mxu1 %v243_v32  ;;  %324 = vmatpush.msra.mxu0 %v291_v48 }
  0x1d   :  { %295 = vmatpush.msrb.mxu3 %v294_v54  ;;  %385 = vmatpush.msra.mxu2 %v292_v51 }
  0x1e   :  { %346 = vmatpush.msra.mxu1 %v245_v35 }
  0x1f   :  { %404 = vmatpush.msra.mxu3 %v243_v32 }
  0x20   :  { %348 = vmatpush.msra.mxu1 %v247_v39 }
  0x21   :  { %406 = vmatpush.msra.mxu3 %v245_v35 }
  0x22   :  { %350 = vmatpush.msra.mxu1 %v249_v44 }
  0x23   :  { %408 = vmatpush.msra.mxu3 %v247_v39 }
  0x25   :  { %410 = vmatpush.msra.mxu3 %v249_v44 }
  0x8c   :  { %v60_v56 = vpop.f32.mrf.mxu0 }
  0x8d   :  { %v61_v57 = vadd.f32 %v435_v55, %v60_v56 }
  0x90   :  { %v101_v58 = vpop.f32.mrf.mxu1  ;;  %v158_v61 = vpop.f32.mrf.mxu3 }
  0x91   :  { %v131_v59 = vpop.f32.mrf.mxu2  ;;  %v102_v60 = vadd.f32 %v101_v58, %v61_v57 }
  0x93   :  { %v132_v62 = vadd.f32 %v131_v59, %v102_v60 }
  0x94   :  { %v191_v63 = vpop.f32.mrf.mxu0 }
  0x95   :  { %v159_v0 = vadd.f32 %v158_v61, %v132_v62 }
  0x97   :  { %v192_v1 = vadd.f32 %v191_v63, %v159_v0 }
  0x98   :  { %v216_v2 = vpop.f32.mrf.mxu1 }
  0x99   :  { %v217_v3 = vadd.f32 %v216_v2, %v192_v1 }
  0x9b   :  { %437 = vtanh.f32 %v217_v3 }
  0xa1   :  { %v438_v4 = vpop.eup %437 }
  0xa2   :  { %v229_v5 = vsel %vm30_vm0, %v438_v4, 0 }
  0xa3   :  { %v251_v6 = vand.u32 4294901760, %v229_v5 }
  0xa5   :  { %297 = vmatmul.f32.vlgmr.msrb.gmra.mxu3 %v251_v6  ;;  %v252_v7 = vsub.f32 %v229_v5, %v251_v6 }
  0xa7   :  { %327 = vmatmul.f32.vlgmr.msra.gmra.mxu0 %v252_v7  ;;  %v253_v8 = vand.u32 4294901760, %v252_v7 }
  0xa9   :  { %354 = vmatmul.f32.vlgmr.msra.gmra.mxu1 %v253_v8  ;;  %v254_v9 = vsub.f32 %v252_v7, %v253_v8 }
  0xab   :  { %v255_v10 = vand.u32 4294901760, %v254_v9 }
  0xad   :  { %256 = vmatmul.f32.vlgmr.msrb.gmra.mxu2 %v255_v10  ;;  %412 = vmatmul.f32.vlgmr.msra.gmra.mxu3 %v251_v6 }
  0xb5   :  { %387 = vmatmul.f32.vlgmr.msra.gmra.mxu2 %v251_v6 }
 0x124   :  { %v328_v16 = vpop.f32.mrf.mxu0 }
 0x126   :  { %v355_v18 = vpop.f32.mrf.mxu1 }
 0x128   :  { %v298_v12 = vpop.f32.mrf.mxu3 }
 0x130   :  { %v257_v13 = vpop.f32.mrf.mxu2  ;;  %v413_v22 = vpop.f32.mrf.mxu3 }
 0x131   :  { %v258_v14 = vadd.f32 %v436_v11, %v257_v13 }
 0x133   :  { %v299_v15 = vadd.f32 %v298_v12, %v258_v14 }
 0x135   :  { %v329_v17 = vadd.f32 %v328_v16, %v299_v15 }
 0x137   :  { %v356_v19 = vadd.f32 %v355_v18, %v329_v17 }
 0x138   :  { %v388_v20 = vpop.f32.mrf.mxu2 }
 0x139   :  { %v389_v21 = vadd.f32 %v388_v20, %v356_v19 }
 0x13b   :  { %v414_v23 = vadd.f32 %v413_v22, %v389_v21 }
 0x13d   :  { %417 = vst.msk [vmem:[#allocation2] sm:$0xff] %vm416_vm1, %v414_v23 }
 0x13e   :  { %428 = dma.vmem_to_hbm [thread:$0]  %s424_s12, 128, %s426_s15, [#allocation3]  }
 0x13f   :  { %463 = dma.done.wait [#allocation3], 128  }
 0x140   :  { %464 = vsyncadd [#allocation3], 4294967168 }
 0x141   :  { %433 = vsyncpa [#allocation3], 1 }

</bundles_post_ra>
